<compile_context>
chip_gen: v7x
topology: tpu7x:2x2x1
jax: 0.10.0
libtpu: 0.0.40
codegen_flags: <defaults>
</compile_context>

<pallas_src>
import functools

import jax
import jax.numpy as jnp
from jax.experimental import pallas as pl
from jax.experimental.pallas import tpu as pltpu


def _emb_kernel(x_ref, w1_ref, b1_ref, emb_ref):
    """embedding = LeakyReLU_0.2(x @ W1^T + b1)   (weights pre-transposed)."""
    h = jnp.dot(x_ref[...], w1_ref[...], preferred_element_type=jnp.float32)
    h = h + b1_ref[...]
    emb_ref[...] = jnp.maximum(h, 0.2 * h)


def _loss_kernel(x_ref, lab_ref, w1_ref, b1_ref, w2_ref, b2_ref, w3_ref, b3_ref,
                 loss_ref, *, inv_batch):
    """fc1 -> LeakyReLU(0.2) -> fc2 -> fc3 -> mean cross-entropy (int labels)."""
    i = pl.program_id(0)

    @pl.when(i == 0)
    def _():
        loss_ref[0, 0] = jnp.float32(0.0)

    # fc1 + LeakyReLU (bf16 MXU inputs, f32 accumulation / elementwise)
    h = jnp.dot(x_ref[...], w1_ref[...],
                preferred_element_type=jnp.float32) + b1_ref[...]
    h = jnp.maximum(h, 0.2 * h)

    # fc2
    z = jnp.dot(h.astype(jnp.bfloat16), w2_ref[...],
                preferred_element_type=jnp.float32) + b2_ref[...]

    # fc3 -> logits
    logits = jnp.dot(z.astype(jnp.bfloat16), w3_ref[...],
                     preferred_element_type=jnp.float32) + b3_ref[...]

    # stabilized log-softmax + NLL of the target class (no one-hot input:
    # the mask is built in-kernel from integer labels).
    m = jnp.max(logits, axis=-1, keepdims=True)
    lse = m + jnp.log(jnp.sum(jnp.exp(logits - m), axis=-1, keepdims=True))
    logp = logits - lse                                            # (TB, C)

    cls = jax.lax.broadcasted_iota(jnp.int32, logp.shape, 1)       # (TB, C)
    mask = (cls == lab_ref[...]).astype(jnp.float32)               # lab: (TB,1)
    nll = -jnp.sum(mask * logp)                                    # sum over tile

    loss_ref[0, 0] += nll * inv_batch


def _pick_batch_tile(b):
    for t in (256, 128, 64, 32, 16, 8):
        if t <= b and b % t == 0:
            return t
    return b  # small / odd batch: single block covering the whole batch


def embedding_model_baseline_forward(features, params, label=None, emb=False):
    """JAX/Pallas equivalent of Embedding_model_baseline.forward."""
    w1t, b1, w2t, b2, w3t, b3 = params       # (in,out) bf16 weights, (1,out) f32 biases
    B, R = features.shape
    H = w1t.shape[1]
    Z = w2t.shape[1]
    C = w3t.shape[1]

    x = features.astype(jnp.bfloat16)
    tb = _pick_batch_tile(B)
    grid = (B // tb,)

    def w_spec(shape):
        return pl.BlockSpec(shape, lambda i: (0, 0))   # resident full block

    if emb:
        cost = pl.CostEstimate(
            flops=2 * B * R * H,
            transcendentals=0,
            bytes_accessed=B * R * 2 + R * H * 2 + H * 4 + B * H * 4)
        return pl.pallas_call(
            _emb_kernel,
            out_shape=jax.ShapeDtypeStruct((B, H), jnp.float32),
            grid=grid,
            in_specs=[pl.BlockSpec((tb, R), lambda i: (i, 0)),
                      w_spec((R, H)), w_spec((1, H))],
            out_specs=pl.BlockSpec((tb, H), lambda i: (i, 0)),
            compiler_params=pltpu.CompilerParams(
                dimension_semantics=("parallel",),
                vmem_limit_bytes=32 * 1024 * 1024),
            cost_estimate=cost,
        )(x, w1t, b1)

    if label is None:
        raise ValueError("label is required when emb=False (loss path).")

    lab = label.astype(jnp.int32).reshape(B, 1)
    cost = pl.CostEstimate(
        flops=2 * B * (R * H + H * Z + Z * C),
        transcendentals=B * (C + 1),
        bytes_accessed=(B * R * 2 + B * 4
                        + (R * H + H * Z + Z * C) * 2
                        + (H + Z + C) * 4 + 4))
    kern = functools.partial(_loss_kernel, inv_batch=1.0 / B)
    loss = pl.pallas_call(
        kern,
        out_shape=jax.ShapeDtypeStruct((1, 1), jnp.float32),
        grid=grid,
        in_specs=[pl.BlockSpec((tb, R), lambda i: (i, 0)),
                  pl.BlockSpec((tb, 1), lambda i: (i, 0)),
                  w_spec((R, H)), w_spec((1, H)),
                  w_spec((H, Z)), w_spec((1, Z)),
                  w_spec((Z, C)), w_spec((1, C))],
        out_specs=pl.BlockSpec((1, 1), lambda i: (0, 0),
                               memory_space=pltpu.MemorySpace.SMEM),
        compiler_params=pltpu.CompilerParams(
            dimension_semantics=("arbitrary",),   # scalar-loss reduction over batch tiles
            vmem_limit_bytes=32 * 1024 * 1024),
        cost_estimate=cost,
    )(x, lab, w1t, b1, w2t, b2, w3t, b3)
    return loss[0, 0]


def init_params(key, res_size, hidden_size, outz_size, class_num):
    """weights_init: Linear.weight ~ N(0, 0.02), Linear.bias = 0.

    Weights are stored pre-transposed as (in, out) in bf16 and biases as
    (1, out) f32, so the forward pass does no per-call transposes/reshapes.
    """
    k1, k2, k3 = jax.random.split(key, 3)
    w1 = 0.02 * jax.random.normal(k1, (hidden_size, res_size), jnp.float32)
    w2 = 0.02 * jax.random.normal(k2, (outz_size, hidden_size), jnp.float32)
    w3 = 0.02 * jax.random.normal(k3, (class_num, outz_size), jnp.float32)
    return (w1.T.astype(jnp.bfloat16), jnp.zeros((1, hidden_size), jnp.float32),
            w2.T.astype(jnp.bfloat16), jnp.zeros((1, outz_size), jnp.float32),
            w3.T.astype(jnp.bfloat16), jnp.zeros((1, class_num), jnp.float32))


if __name__ == "__main__":
    # Small shapes implied by the module: opt.resSize, opt.hidden_size,
    # opt.outzSize, opt.class_num.
    B, RES, HID, OUTZ, NCLS = 8, 32, 32, 16, 10

    key = jax.random.PRNGKey(0)
    k_x, k_y, k_p = jax.random.split(key, 3)
    features = jax.random.normal(k_x, (B, RES), jnp.float32)
    label = jax.random.randint(k_y, (B,), 0, NCLS)
    params = init_params(k_p, RES, HID, OUTZ, NCLS)

    # Default path: mean cross-entropy loss (scalar).
    loss = embedding_model_baseline_forward(features, params, label=label, emb=False)
    loss = jax.block_until_ready(loss)

    # emb=True path: LeakyReLU(fc1(x)) embedding.
    embedding = embedding_model_baseline_forward(features, params, emb=True)
    embedding = jax.block_until_ready(embedding)

    # Reference with identical arithmetic (bf16 MXU inputs, f32 accumulation).
    w1t, b1, w2t, b2, w3t, b3 = params
    xb = features.astype(jnp.bfloat16)
    h_ref = jnp.dot(xb, w1t, preferred_element_type=jnp.float32) + b1
    h_ref = jnp.maximum(h_ref, 0.2 * h_ref)
    z_ref = jnp.dot(h_ref.astype(jnp.bfloat16), w2t,
                    preferred_element_type=jnp.float32) + b2
    logits_ref = jnp.dot(z_ref.astype(jnp.bfloat16), w3t,
                         preferred_element_type=jnp.float32) + b3
    logp_ref = jax.nn.log_softmax(logits_ref, axis=-1)
    loss_ref = -jnp.mean(logp_ref[jnp.arange(B), label])

    assert jnp.allclose(embedding, h_ref, atol=1e-4), (embedding, h_ref)
    assert jnp.allclose(loss, loss_ref, atol=1e-4), (loss, loss_ref)

    print("KERNEL_OK")
</pallas_src>

<mosaic_0001>
module attributes {stable_mosaic.version = 11 : i64} {
  func.func @_loss_kernel(%arg0: i32, %arg1: memref<8x32xbf16, #tpu.memory_space<vmem>>, %arg2: memref<8x1xi32, #tpu.memory_space<vmem>>, %arg3: memref<32x32xbf16, #tpu.memory_space<vmem>>, %arg4: memref<1x32xf32, #tpu.memory_space<vmem>>, %arg5: memref<32x16xbf16, #tpu.memory_space<vmem>>, %arg6: memref<1x16xf32, #tpu.memory_space<vmem>>, %arg7: memref<16x10xbf16, #tpu.memory_space<vmem>>, %arg8: memref<1x10xf32, #tpu.memory_space<vmem>>, %arg9: memref<1x1xf32, #tpu.memory_space<smem>>) attributes {dimension_semantics = [#tpu.dimension_semantics<arbitrary>], iteration_bounds = array<i64: 1>, scalar_prefetch = 0 : i64, scratch_operands = 0 : i64, tpu.core_type = #tpu.core_type<tc>, window_params = [{transform_indices = @transform_0, window_bounds = array<i64: 8, 32>}, {transform_indices = @transform_1, window_bounds = array<i64: 8, 1>}, {pipeline_mode = #tpu.pipeline_mode<synchronous>, transform_indices = @transform_2, window_bounds = array<i64: 32, 32>}, {pipeline_mode = #tpu.pipeline_mode<synchronous>, transform_indices = @transform_3, window_bounds = array<i64: 1, 32>}, {pipeline_mode = #tpu.pipeline_mode<synchronous>, transform_indices = @transform_4, window_bounds = array<i64: 32, 16>}, {pipeline_mode = #tpu.pipeline_mode<synchronous>, transform_indices = @transform_5, window_bounds = array<i64: 1, 16>}, {pipeline_mode = #tpu.pipeline_mode<synchronous>, transform_indices = @transform_6, window_bounds = array<i64: 16, 10>}, {pipeline_mode = #tpu.pipeline_mode<synchronous>, transform_indices = @transform_7, window_bounds = array<i64: 1, 10>}, {transform_indices = @transform_8, window_bounds = array<i64: 1, 1>}]} {
    %c0_i32 = arith.constant 0 : i32
    %0 = arith.cmpi eq, %arg0, %c0_i32 : i32
    %1 = arith.extui %0 : i1 to i32
    %c0_i32_0 = arith.constant 0 : i32
    %2 = arith.cmpi ne, %1, %c0_i32_0 : i32
    scf.if %2 {
      %cst_28 = arith.constant 0.000000e+00 : f32
      %c0_29 = arith.constant 0 : index
      %c0_30 = arith.constant 0 : index
      %51 = memref.load %arg9[%c0_29, %c0_30] : memref<1x1xf32, #tpu.memory_space<smem>>
      memref.store %cst_28, %arg9[%c0_29, %c0_30] : memref<1x1xf32, #tpu.memory_space<smem>>
    } else {
    }
    %c0 = arith.constant 0 : index
    %c0_1 = arith.constant 0 : index
    %3 = vector.load %arg1[%c0, %c0_1] : memref<8x32xbf16, #tpu.memory_space<vmem>>, vector<8x32xbf16>
    %c0_2 = arith.constant 0 : index
    %c0_3 = arith.constant 0 : index
    %4 = vector.load %arg3[%c0_2, %c0_3] : memref<32x32xbf16, #tpu.memory_space<vmem>>, vector<32x32xbf16>
    %cst = arith.constant dense<0.000000e+00> : vector<8x32xf32>
    %5 = tpu.matmul %3, %4, %cst {dimension_numbers = #tpu.dot_dimension_numbers<[1], [0], [0], [1], [0, 0, 1, 1], [], []>} : vector<8x32xbf16>, vector<32x32xbf16>, vector<8x32xf32> -> vector<8x32xf32>
    %c0_4 = arith.constant 0 : index
    %c0_5 = arith.constant 0 : index
    %6 = vector.load %arg4[%c0_4, %c0_5] : memref<1x32xf32, #tpu.memory_space<vmem>>, vector<1x32xf32>
    %7 = vector.broadcast %6 : vector<1x32xf32> to vector<8x32xf32>
    %8 = arith.addf %5, %7 : vector<8x32xf32>
    %cst_6 = arith.constant 2.000000e-01 : f32
    %9 = vector.broadcast %cst_6 : f32 to vector<8x32xf32>
    %10 = arith.mulf %9, %8 : vector<8x32xf32>
    %11 = arith.maximumf %8, %10 : vector<8x32xf32>
    %12 = arith.truncf %11 : vector<8x32xf32> to vector<8x32xbf16>
    %c0_7 = arith.constant 0 : index
    %c0_8 = arith.constant 0 : index
    %13 = vector.load %arg5[%c0_7, %c0_8] : memref<32x16xbf16, #tpu.memory_space<vmem>>, vector<32x16xbf16>
    %cst_9 = arith.constant dense<0.000000e+00> : vector<8x16xf32>
    %14 = tpu.matmul %12, %13, %cst_9 {dimension_numbers = #tpu.dot_dimension_numbers<[1], [0], [0], [1], [0, 0, 1, 1], [], []>} : vector<8x32xbf16>, vector<32x16xbf16>, vector<8x16xf32> -> vector<8x16xf32>
    %c0_10 = arith.constant 0 : index
    %c0_11 = arith.constant 0 : index
    %15 = vector.load %arg6[%c0_10, %c0_11] : memref<1x16xf32, #tpu.memory_space<vmem>>, vector<1x16xf32>
    %16 = vector.broadcast %15 : vector<1x16xf32> to vector<8x16xf32>
    %17 = arith.addf %14, %16 : vector<8x16xf32>
    %18 = arith.truncf %17 : vector<8x16xf32> to vector<8x16xbf16>
    %c0_12 = arith.constant 0 : index
    %c0_13 = arith.constant 0 : index
    %19 = vector.load %arg7[%c0_12, %c0_13] : memref<16x10xbf16, #tpu.memory_space<vmem>>, vector<16x10xbf16>
    %cst_14 = arith.constant dense<0.000000e+00> : vector<8x10xf32>
    %20 = tpu.matmul %18, %19, %cst_14 {dimension_numbers = #tpu.dot_dimension_numbers<[1], [0], [0], [1], [0, 0, 1, 1], [], []>} : vector<8x16xbf16>, vector<16x10xbf16>, vector<8x10xf32> -> vector<8x10xf32>
    %c0_15 = arith.constant 0 : index
    %c0_16 = arith.constant 0 : index
    %21 = vector.load %arg8[%c0_15, %c0_16] : memref<1x10xf32, #tpu.memory_space<vmem>>, vector<1x10xf32>
    %22 = vector.broadcast %21 : vector<1x10xf32> to vector<8x10xf32>
    %23 = arith.addf %20, %22 : vector<8x10xf32>
    %cst_17 = arith.constant dense<0xFF800000> : vector<8xf32>
    %24 = vector.multi_reduction <maximumf>, %23, %cst_17 [1] : vector<8x10xf32> to vector<8xf32>
    %25 = vector.shape_cast %24 : vector<8xf32> to vector<8x1xf32>
    %26 = vector.broadcast %25 : vector<8x1xf32> to vector<8x10xf32>
    %27 = arith.subf %23, %26 : vector<8x10xf32>
    %28 = math.exp %27 : vector<8x10xf32>
    %cst_18 = arith.constant dense<0.000000e+00> : vector<8xf32>
    %29 = vector.multi_reduction <add>, %28, %cst_18 [1] : vector<8x10xf32> to vector<8xf32>
    %30 = vector.shape_cast %29 : vector<8xf32> to vector<8x1xf32>
    %31 = math.log %30 : vector<8x1xf32>
    %32 = arith.addf %25, %31 : vector<8x1xf32>
    %33 = vector.broadcast %32 : vector<8x1xf32> to vector<8x10xf32>
    %34 = arith.subf %23, %33 : vector<8x10xf32>
    %35 = tpu.iota {dimensions = array<i32: 1>} : vector<8x10xi32>
    %c0_19 = arith.constant 0 : index
    %c0_20 = arith.constant 0 : index
    %36 = vector.load %arg2[%c0_19, %c0_20] : memref<8x1xi32, #tpu.memory_space<vmem>>, vector<8x1xi32>
    %37 = vector.broadcast %36 : vector<8x1xi32> to vector<8x10xi32>
    %38 = arith.cmpi eq, %35, %37 : vector<8x10xi32>
    %39 = arith.extui %38 : vector<8x10xi1> to vector<8x10xi32>
    %40 = arith.sitofp %39 : vector<8x10xi32> to vector<8x10xf32>
    %41 = arith.mulf %40, %34 : vector<8x10xf32>
    %42 = vector.shape_cast %41 : vector<8x10xf32> to vector<1x8x10xf32>
    %cst_21 = arith.constant dense<0.000000e+00> : vector<1xf32>
    %43 = vector.multi_reduction <add>, %42, %cst_21 [1, 2] : vector<1x8x10xf32> to vector<1xf32>
    %44 = vector.shape_cast %43 : vector<1xf32> to vector<1x1x1xf32>
    %45 = vector.extract %44[0, 0, 0] : f32 from vector<1x1x1xf32>
    %cst_22 = arith.constant 0.000000e+00 : f32
    %46 = arith.subf %cst_22, %45 : f32
    %c0_23 = arith.constant 0 : index
    %c0_24 = arith.constant 0 : index
    %47 = memref.load %arg9[%c0_23, %c0_24] : memref<1x1xf32, #tpu.memory_space<smem>>
    %cst_25 = arith.constant 1.250000e-01 : f32
    %48 = arith.mulf %46, %cst_25 : f32
    %49 = arith.addf %47, %48 : f32
    %c0_26 = arith.constant 0 : index
    %c0_27 = arith.constant 0 : index
    %50 = memref.load %arg9[%c0_26, %c0_27] : memref<1x1xf32, #tpu.memory_space<smem>>
    memref.store %49, %arg9[%c0_26, %c0_27] : memref<1x1xf32, #tpu.memory_space<smem>>
    return
  }
  func.func @transform_0(%arg0: i32) -> (i32, i32) {
    %c0_i32 = arith.constant 0 : i32
    %c0_i32_0 = arith.constant 0 : i32
    return %arg0, %c0_i32 : i32, i32
  }
  func.func @transform_1(%arg0: i32) -> (i32, i32) {
    %c0_i32 = arith.constant 0 : i32
    %c0_i32_0 = arith.constant 0 : i32
    return %arg0, %c0_i32 : i32, i32
  }
  func.func @transform_2(%arg0: i32) -> (i32, i32) {
    %c0_i32 = arith.constant 0 : i32
    %c0_i32_0 = arith.constant 0 : i32
    %c0_i32_1 = arith.constant 0 : i32
    return %c0_i32, %c0_i32_0 : i32, i32
  }
  func.func @transform_3(%arg0: i32) -> (i32, i32) {
    %c0_i32 = arith.constant 0 : i32
    %c0_i32_0 = arith.constant 0 : i32
    %c0_i32_1 = arith.constant 0 : i32
    return %c0_i32, %c0_i32_0 : i32, i32
  }
  func.func @transform_4(%arg0: i32) -> (i32, i32) {
    %c0_i32 = arith.constant 0 : i32
    %c0_i32_0 = arith.constant 0 : i32
    %c0_i32_1 = arith.constant 0 : i32
    return %c0_i32, %c0_i32_0 : i32, i32
  }
  func.func @transform_5(%arg0: i32) -> (i32, i32) {
    %c0_i32 = arith.constant 0 : i32
    %c0_i32_0 = arith.constant 0 : i32
    %c0_i32_1 = arith.constant 0 : i32
    return %c0_i32, %c0_i32_0 : i32, i32
  }
  func.func @transform_6(%arg0: i32) -> (i32, i32) {
    %c0_i32 = arith.constant 0 : i32
    %c0_i32_0 = arith.constant 0 : i32
    %c0_i32_1 = arith.constant 0 : i32
    return %c0_i32, %c0_i32_0 : i32, i32
  }
  func.func @transform_7(%arg0: i32) -> (i32, i32) {
    %c0_i32 = arith.constant 0 : i32
    %c0_i32_0 = arith.constant 0 : i32
    %c0_i32_1 = arith.constant 0 : i32
    return %c0_i32, %c0_i32_0 : i32, i32
  }
  func.func @transform_8(%arg0: i32) -> (i32, i32) {
    %c0_i32 = arith.constant 0 : i32
    %c0_i32_0 = arith.constant 0 : i32
    %c0_i32_1 = arith.constant 0 : i32
    return %c0_i32, %c0_i32_0 : i32, i32
  }
}

</mosaic_0001>

<bundles_post_ra>
// kernel: tpu_custom_call.1
= control target key start
LH: loop header
LB: loop body
LE: loop exit
PB: predicated region body
PF: predicated region fallthrough
CT: control target
= control target key end

     0   :  { %v359_v1 = vmov 0.0   ;;  %vm360_vm0 = vmmov 0   ;;  %s464_s0 = inlined_call_operand.vmem [shape: bf16[8,32], index: 0, kind: input, shape index: {}]   ;;  %s465_s1 = inlined_call_operand.vmem [shape: s32[8,1], index: 1, kind: input, shape index: {}]   ;;  %s466_s2 = inlined_call_operand.vmem [shape: bf16[32,32], index: 2, kind: input, shape index: {}]   ;;  %s467_s3 = inlined_call_operand.vmem [shape: f32[1,32], index: 3, kind: input, shape index: {}]   ;;  %s468_s4 = inlined_call_operand.vmem [shape: bf16[32,16], index: 4, kind: input, shape index: {}]   ;;  %s469_s5 = inlined_call_operand.vmem [shape: f32[1,16], index: 5, kind: input, shape index: {}]   ;;  %s470_s6 = inlined_call_operand.vmem [shape: bf16[16,10], index: 6, kind: input, shape index: {}]   ;;  %s471_s7 = inlined_call_operand.vmem [shape: f32[1,10], index: 7, kind: input, shape index: {}]   ;;  %s472_s8 = inlined_call_operand.hbm [shape: f32[1,1], index: 8, kind: output, shape index: {}]  }
   0x1   :  { %v338_v0 = vld [vmem:[%s466_s2] sm:$0xff]   ;;  %307 = vmatprep.subr.bf16.mxu0 %v359_v1  ;;  %315 = vmatprep.subr.bf16.mxu1 %v359_v1  ;;  %v339_v2 = vld [vmem:[%s466_s2 + $0x8] sm:$0xff]  }
   0x2   :  { %308 = vmatpush3.bf16.msra.mxu0 %v338_v0  ;;  %311 = vmatprep.mubr.msk.bf16.mxu0 %vm360_vm0, %v359_v1 }
   0x3   :  { %309 = vmatprep.subr.bf16.mxu0 %v359_v1  ;;  %319 = vmatprep.mubr.msk.bf16.mxu1 %vm360_vm0, %v359_v1 }
   0x4   :  { %13 = vsyncpa [#allocation3], 0  ;;  %v37_v3 = vld [vmem:[%s464_s0] sm:$0xf]  ;;  %vm61_vm1 = vcmask 261120   ;;  %v341_v5 = vld [vmem:[%s468_s4 + $0x8] sm:$0xff]   ;;  %v248_v38 = vlaneseq }
   0x5   :  { %v340_v4 = vld [vmem:[%s468_s4] sm:$0xff]   ;;  %vm190_vm2 = vcmask 130048   ;;  %vm234_vm3 = vcmask 80896   ;;  %v361_v31 = vmov 0   ;;  %s347_s22 = scalar_lea.hbm %s472_s8, 16 }
   0x6   :  { %310 = vmatpush3.bf16.msra.mxu0 %v339_v2  ;;  %316 = vmatpush3.bf16.msra.mxu1 %v340_v4  ;;  %v342_v6 = vld [vmem:[%s470_s6] sm:$0xff]   ;;  %v249_v39 = vand.u32 127, %v248_v38  ;;  %p348_p0 = scmp.ne.s32.totalorder %s472_s8, %s347_s22  ;;  %p351_p1 = scmp.lt.u32.totalorder %s347_s22, %s472_s8 }
   0x7   :  { %323 = vmatprep.subr.bf16.mxu0 %v359_v1  ;;  %317 = vmatprep.subr.bf16.mxu1 %v359_v1  ;;  %v287_v7 = vld [vmem:[%s467_s3] ss:$0 sm:$0xff] }
   0x8   :  { %v291_v16 = vld [vmem:[%s469_s5] ss:$0 sm:$0xff]  ;;  %336 = vset.pattern.permute.xlu1 %v361_v31  ;;  %337 = vset.pattern.permute.xlu0 %v361_v31  ;;  %p353_p2 = pnand %p351_p1, %p348_p0 }
   0x9   :  { %312 = vmatmul.mubr.msk.bf16.vlgmr.msra.gmra.mrb[0].mxu0 %vm61_vm1, %v37_v3  ;;  %v295_v23 = vld [vmem:[%s471_s7] ss:$0 sm:$0xff] }
   0xa   :  { %325 = vmatprep.mubr.msk.bf16.mxu0 %vm360_vm0, %v359_v1  ;;  %318 = vmatpush3.bf16.msra.mxu1 %v341_v5  ;;  %v250_v30 = vld [vmem:[%s465_s1] sm:$0xff] }
   0xb   :  { %324 = vmatpush3.bf16.msra.mxu0 %v342_v6  ;;  %252 = vperm.xlu1 %336, %v250_v30  }
  0x8a   :  { %v253_v40 = vpop.permute.xlu1 %252 }
  0x8b   :  { %vm254_vm4 = vcmp.eq.s32.totalorder %v249_v39, %v253_v40 }
  0x8c   :  { %v298_v44 = vsel %vm254_vm4, 1.0, %v359_v1 }
  0xdc   :  { %v99_v8 = vpop.f32.mrb[0].mxu0 }
  0xdd   :  { %v100_v9 = vadd.f32 %v287_v7, %v99_v8  ;;  %v313_v10 = vpop.f32.mrb[1].mxu0 }
  0xde   :  { %v102_v11 = vpop.f32.mrb[2].mxu0 }
  0xdf   :  { %v105_v12 = vmul.f32 0.2, %v100_v9  ;;  %v314_v13 = vpop.f32.mrb[3].mxu0 }
  0xe1   :  { %v106_v14 = vmax.f32 %v100_v9, %v105_v12 }
  0xe3   :  { %v107_v15 = vpack.c.bf16 %v106_v14, %v106_v14 }
  0xe5   :  { %320 = vmatmul.mubr.msk.bf16.vlgmr.msra.gmra.mrb[0].mxu1 %vm61_vm1, %v107_v15 }
 0x1b8   :  { %v168_v17 = vpop.f32.mrb[0].mxu1 }
 0x1b9   :  { %v169_v18 = vadd.f32 %v291_v16, %v168_v17  ;;  %v321_v19 = vpop.f32.mrb[1].mxu1 }
 0x1ba   :  { %v171_v20 = vpop.f32.mrb[2].mxu1 }
 0x1bb   :  { %v174_v21 = vpack.c.bf16 %v169_v18, %v169_v18  ;;  %v322_v22 = vpop.f32.mrb[3].mxu1 }
 0x1bd   :  { %326 = vmatmul.mubr.msk.bf16.vlgmr.msra.gmra.mrb[4].mxu0 %vm190_vm2, %v174_v21 }
 0x290   :  { %v228_v24 = vpop.f32.mrb[4].mxu0 }
 0x291   :  { %v229_v25 = vadd.f32 %v295_v23, %v228_v24  ;;  %v327_v26 = vpop.f32.mrb[5].mxu0 }
 0x292   :  { %v231_v27 = vpop.f32.mrb[6].mxu0 }
 0x293   :  { %v328_v28 = vpop.f32.mrb[7].mxu0  ;;  %v235_v29 = vsel %vm234_vm3, %v229_v25, -inf }
 0x294   :  { %236 = vmax.xlane.f32.xlu0 %v235_v29 }
 0x321   :  { %v237_v32 = vpop.xlane.xlu0 %236 }
 0x322   :  { %v238_v33 = vsub.f32 %v229_v25, %v237_v32 }
 0x324   :  { %v239_v34 = vmul.f32 1.442695, %v238_v33 }
 0x326   :  { %343 = vpow2.f32 %v239_v34 }
 0x330   :  { %v344_v35 = vpop.eup %343 }
 0x331   :  { %v241_v36 = vsel %vm234_vm3, %v344_v35, 0.0 }
 0x332   :  { %242 = vadd.xlane.f32.xlu0 %v241_v36 }
 0x3bf   :  { %v243_v37 = vpop.xlane.xlu0 %242 }
 0x3c0   :  { %345 = vlog2.f32 %v243_v37 }
 0x3ca   :  { %v346_v41 = vpop.eup %345 }
 0x3cb   :  { %v245_v42 = vmul.f32 0.6931472, %v346_v41 }
 0x3cd   :  { %v246_v43 = vadd.f32 %v245_v42, %v237_v32 }
 0x3cf   :  { %v247_v45 = vsub.f32 %v229_v25, %v246_v43 }
 0x3d1   :  { %v257_v46 = vmul.f32 %v298_v44, %v247_v45 }
 0x3d3   :  { %v258_v47 = vsel %vm234_vm3, %v257_v46, 0.0 }
 0x3d4   :  { %259 = vadd.xlane.f32.xlu1 %v258_v47 }
 0x461   :  { %v260_v48 = vpop.xlane.xlu1 %259 }
 0x462   :  { %v261_v49 = vrot.slane %v260_v48, 4 }
 0x464   :  { %v262_v50 = vadd.f32 %v261_v49, %v260_v48 }
 0x466   :  { %v263_v51 = vrot.slane %v262_v50, 2 }
 0x468   :  { %v264_v52 = vadd.f32 %v263_v51, %v262_v50 }
 0x46a   :  { %v265_v53 = vrot.slane %v264_v52, 1 }
 0x46c   :  { %v266_v54 = vadd.f32 %v265_v53, %v264_v52 }
 0x46e   :  { %329 = vpush %v266_v54 }
 0x49f   :  { %s330_s1 = spop %329 }
 0x4a0   :  { %s268_s7 = ssub.f32 0.0, %s330_s1 }
 0x4a2   :  { %s270_s19 = smul.f32 0.125, %s268_s7 }
 0x4a4   :  { %273 = sst [smem:[#allocation2]] %s270_s19 }
 0x4a5   :  { %356 = shalt.err (!%p353_p2)
}
 0x4a6   :  { %s362_s27 = smov [#allocation2]  }
 0x4a7   :  { %281 = dma.smem_to_hbm %s362_s27, 16, %s472_s8, [#allocation3]  }
 0x4a8   :  { %357 = dma.done.wait [#allocation3], 16  }
 0x4a9   :  { %358 = vsyncadd [#allocation3], 4294967280 }
 0x4aa   :  { %285 = sfence }
 0x4ab   :  { %286 = vsyncpa [#allocation3], 1 }

</bundles_post_ra>
